<compile_context>
chip_gen: v7x
topology: tpu7x:2x2x1
jax: 0.10.0
libtpu: 0.0.40
codegen_flags: <defaults>
</compile_context>

<pallas_src>
import functools

import jax
import jax.numpy as jnp
from jax.experimental import pallas as pl
from jax.experimental.pallas import tpu as pltpu

LATENT_DIM = 20
HIDDEN = 128
MID = 256
NUM_CLASSES = 10
BN_EPS = 1e-5
LEAKY_SLOPE = 0.01  # torch.nn.LeakyReLU default


def _round_up(n, m):
    return ((n + m - 1) // m) * m


# --------------------------------------------------------------------------- kernel
def _classifier_head_kernel(x_ref,
                            w1_ref, b1_ref,
                            w2_ref, b2_ref,
                            w3_ref, b3_ref,
                            o_ref):
    # Layer 1: Linear(latent -> hidden) (BN folded into w/b), Dropout(eval)=id, LeakyReLU.
    x = x_ref[...].astype(jnp.bfloat16)
    h = jnp.dot(x, w1_ref[...], preferred_element_type=jnp.float32) + b1_ref[...]
    h = jnp.maximum(h, LEAKY_SLOPE * h)

    # Layer 2: Linear(hidden -> 256) (BN folded), Dropout(eval)=id, LeakyReLU.
    h = jnp.dot(h.astype(jnp.bfloat16), w2_ref[...],
                preferred_element_type=jnp.float32) + b2_ref[...]
    h = jnp.maximum(h, LEAKY_SLOPE * h)

    # Layer 3: Linear(256 -> num_classes padded to 128 lanes), no activation.
    out = jnp.dot(h.astype(jnp.bfloat16), w3_ref[...],
                  preferred_element_type=jnp.float32) + b3_ref[...]
    o_ref[...] = out.astype(o_ref.dtype)


# ------------------------------------------------------------------ param preparation
def _fold_bn(gamma, beta, mean, var):
    scale = gamma / jnp.sqrt(var + BN_EPS)
    shift = beta - mean * scale
    return scale.astype(jnp.float32), shift.astype(jnp.float32)


def prepare_params(params):
    """One-time preprocessing (run once, reuse across forward calls):
    fold eval-mode BatchNorm into weights/biases, cast matmul weights to bf16,
    and lane-pad the final layer to a multiple of 128 for unmasked output stores."""
    (w1, b1, g1, be1, m1, v1,
     w2, b2, g2, be2, m2, v2,
     w3, b3) = params

    s1, t1 = _fold_bn(g1, be1, m1, v1)
    s2, t2 = _fold_bn(g2, be2, m2, v2)

    w1f = (w1 * s1).astype(jnp.bfloat16)          # BN scale folded into weight columns
    b1f = (b1 * s1 + t1).astype(jnp.float32)      # BN shift folded into bias
    w2f = (w2 * s2).astype(jnp.bfloat16)
    b2f = (b2 * s2 + t2).astype(jnp.float32)

    mid, num_classes = w3.shape
    c_pad = _round_up(num_classes, 128)
    w3p = jnp.zeros((mid, c_pad), jnp.bfloat16).at[:, :num_classes].set(
        w3.astype(jnp.bfloat16))
    b3p = jnp.zeros((1, c_pad), jnp.float32).at[:, :num_classes].set(
        b3.astype(jnp.float32))

    prepared = (w1f, b1f, w2f, b2f, w3p, b3p)
    return jax.tree_util.tree_map(jax.block_until_ready, prepared)


# --------------------------------------------------------------------------- wrapper
def _choose_tiling(B, max_tile_b, min_tiles):
    """Pick a batch tile that (a) bounds zero-row padding to < one sublane group per
    tile, (b) yields >= min_tiles grid steps when B allows (v7x megacore sharding),
    and (c) never exceeds max_tile_b."""
    b8 = _round_up(max(B, 1), 8)
    n_tiles = max(1, -(-b8 // max_tile_b))
    if b8 >= 8 * min_tiles:
        n_tiles = max(n_tiles, min_tiles)
    tile_b = min(max_tile_b, _round_up(-(-B // n_tiles), 8))
    b_pad = _round_up(B, tile_b)
    return tile_b, b_pad


@functools.partial(jax.jit,
                   static_argnames=("num_classes", "max_tile_b", "min_tiles",
                                    "out_dtype"))
def classifier_forward(x, prepared, *, num_classes=NUM_CLASSES, max_tile_b=1024,
                       min_tiles=2, out_dtype=jnp.float32):
    """x: (B, latent_dim) f32 latent features (post-encoder).
    prepared: output of prepare_params().  Returns (B, num_classes) logits."""
    w1f, b1f, w2f, b2f, w3p, b3p = prepared
    B, latent = x.shape
    c_pad = w3p.shape[1]

    tile_b, b_pad = _choose_tiling(B, max_tile_b, min_tiles)
    x_p = x
    if b_pad != B:
        x_p = jnp.zeros((b_pad, latent), x.dtype).at[:B, :].set(x)

    def resident(arr):  # weights / biases: same block every grid step -> stay in VMEM
        return pl.BlockSpec(arr.shape, lambda i: (0, 0))

    out = pl.pallas_call(
        _classifier_head_kernel,
        out_shape=jax.ShapeDtypeStruct((b_pad, c_pad), out_dtype),
        grid=(b_pad // tile_b,),
        in_specs=[
            pl.BlockSpec((tile_b, latent), lambda i: (i, 0)),   # activation tile
            resident(w1f), resident(b1f),
            resident(w2f), resident(b2f),
            resident(w3p), resident(b3p),
        ],
        out_specs=pl.BlockSpec((tile_b, c_pad), lambda i: (i, 0)),
        compiler_params=pltpu.CompilerParams(
            dimension_semantics=("parallel",),   # shard batch tiles over v7x's 2 TCs
            vmem_limit_bytes=16 << 20,
        ),
    )(x_p, w1f, b1f, w2f, b2f, w3p, b3p)

    return out[:B, :num_classes]


# ------------------------------------------------------------------------ init / ref
def init_params(key, latent_dim=LATENT_DIM, hidden=HIDDEN, mid=MID,
                num_classes=NUM_CLASSES):
    """torch.nn.Linear-style init (uniform +/- 1/sqrt(fan_in)); BN has non-trivial
    running stats so the eval-mode BatchNorm path is actually exercised.
    Weights stored transposed vs PyTorch: shape (in, out). Biases/BN vectors (1, out)."""
    ks = jax.random.split(key, 12)

    def linear(kw, kb, fan_in, fan_out):
        bound = 1.0 / jnp.sqrt(fan_in)
        w = jax.random.uniform(kw, (fan_in, fan_out), jnp.float32, -bound, bound)
        b = jax.random.uniform(kb, (1, fan_out), jnp.float32, -bound, bound)
        return w, b

    def bn(km, kv, n):
        gamma = jnp.ones((1, n), jnp.float32)
        beta = jnp.zeros((1, n), jnp.float32)
        mean = 0.1 * jax.random.normal(km, (1, n), jnp.float32)
        var = 0.5 + jnp.abs(jax.random.normal(kv, (1, n), jnp.float32))
        return gamma, beta, mean, var

    w1, b1 = linear(ks[0], ks[1], latent_dim, hidden)
    g1, be1, m1, v1 = bn(ks[2], ks[3], hidden)
    w2, b2 = linear(ks[4], ks[5], hidden, mid)
    g2, be2, m2, v2 = bn(ks[6], ks[7], mid)
    w3, b3 = linear(ks[8], ks[9], mid, num_classes)
    return (w1, b1, g1, be1, m1, v1, w2, b2, g2, be2, m2, v2, w3, b3)


def classifier_reference(x, params):
    """Plain-JAX eval-mode forward, mirroring the kernel's BN-into-weights fold and
    bf16 matmul-input rounding so the comparison is tight."""
    (w1, b1, g1, be1, m1, v1,
     w2, b2, g2, be2, m2, v2,
     w3, b3) = params
    s1, t1 = _fold_bn(g1, be1, m1, v1)
    s2, t2 = _fold_bn(g2, be2, m2, v2)

    def bf(a):
        return a.astype(jnp.bfloat16).astype(jnp.float32)

    h = bf(x) @ bf(w1 * s1) + (b1 * s1 + t1)
    h = jnp.maximum(h, LEAKY_SLOPE * h)
    h = bf(h) @ bf(w2 * s2) + (b2 * s2 + t2)
    h = jnp.maximum(h, LEAKY_SLOPE * h)
    return bf(h) @ bf(w3) + b3


# ------------------------------------------------------------------------------ main
if __name__ == "__main__":
    key = jax.random.PRNGKey(0)
    k_params, k_x1, k_x2 = jax.random.split(key, 3)

    params = init_params(k_params)
    prepared = prepare_params(params)   # one-time; reused across forward calls

    # Small batch (single tile).
    B = 8
    x = jax.random.normal(k_x1, (B, LATENT_DIM), dtype=jnp.float32)
    out = jax.block_until_ready(classifier_forward(x, prepared))
    ref = classifier_reference(x, params)
    assert out.shape == (B, NUM_CLASSES), out.shape
    assert jnp.allclose(out, ref, atol=2e-3, rtol=2e-3), "mismatch vs reference (B=8)"

    # Awkward batch (exercises >=2 grid tiles + zero-row padding path).
    B2 = 50
    x2 = jax.random.normal(k_x2, (B2, LATENT_DIM), dtype=jnp.float32)
    out2 = jax.block_until_ready(classifier_forward(x2, prepared))
    ref2 = classifier_reference(x2, params)
    assert out2.shape == (B2, NUM_CLASSES), out2.shape
    assert jnp.allclose(out2, ref2, atol=2e-3, rtol=2e-3), "mismatch vs reference (B=50)"

    print("KERNEL_OK")
</pallas_src>

<mosaic_0001>
module attributes {stable_mosaic.version = 11 : i64} {
  func.func @_classifier_head_kernel(%arg0: i32, %arg1: memref<8x20xf32, #tpu.memory_space<vmem>>, %arg2: memref<20x128xbf16, #tpu.memory_space<vmem>>, %arg3: memref<1x128xf32, #tpu.memory_space<vmem>>, %arg4: memref<128x256xbf16, #tpu.memory_space<vmem>>, %arg5: memref<1x256xf32, #tpu.memory_space<vmem>>, %arg6: memref<256x128xbf16, #tpu.memory_space<vmem>>, %arg7: memref<1x128xf32, #tpu.memory_space<vmem>>, %arg8: memref<8x128xf32, #tpu.memory_space<vmem>>) attributes {dimension_semantics = [#tpu.dimension_semantics<parallel>], iteration_bounds = array<i64: 1>, scalar_prefetch = 0 : i64, scratch_operands = 0 : i64, tpu.core_type = #tpu.core_type<tc>, window_params = [{transform_indices = @transform_0, window_bounds = array<i64: 8, 20>}, {pipeline_mode = #tpu.pipeline_mode<synchronous>, transform_indices = @transform_1, window_bounds = array<i64: 20, 128>}, {pipeline_mode = #tpu.pipeline_mode<synchronous>, transform_indices = @transform_2, window_bounds = array<i64: 1, 128>}, {pipeline_mode = #tpu.pipeline_mode<synchronous>, transform_indices = @transform_3, window_bounds = array<i64: 128, 256>}, {pipeline_mode = #tpu.pipeline_mode<synchronous>, transform_indices = @transform_4, window_bounds = array<i64: 1, 256>}, {pipeline_mode = #tpu.pipeline_mode<synchronous>, transform_indices = @transform_5, window_bounds = array<i64: 256, 128>}, {pipeline_mode = #tpu.pipeline_mode<synchronous>, transform_indices = @transform_6, window_bounds = array<i64: 1, 128>}, {transform_indices = @transform_7, window_bounds = array<i64: 8, 128>}]} {
    %c0 = arith.constant 0 : index
    %c0_0 = arith.constant 0 : index
    %0 = vector.load %arg1[%c0, %c0_0] : memref<8x20xf32, #tpu.memory_space<vmem>>, vector<8x20xf32>
    %1 = arith.truncf %0 : vector<8x20xf32> to vector<8x20xbf16>
    %c0_1 = arith.constant 0 : index
    %c0_2 = arith.constant 0 : index
    %2 = vector.load %arg2[%c0_1, %c0_2] : memref<20x128xbf16, #tpu.memory_space<vmem>>, vector<20x128xbf16>
    %cst = arith.constant dense<0.000000e+00> : vector<8x128xf32>
    %3 = tpu.matmul %1, %2, %cst {dimension_numbers = #tpu.dot_dimension_numbers<[1], [0], [0], [1], [0, 0, 1, 1], [], []>} : vector<8x20xbf16>, vector<20x128xbf16>, vector<8x128xf32> -> vector<8x128xf32>
    %c0_3 = arith.constant 0 : index
    %c0_4 = arith.constant 0 : index
    %4 = vector.load %arg3[%c0_3, %c0_4] : memref<1x128xf32, #tpu.memory_space<vmem>>, vector<1x128xf32>
    %5 = vector.broadcast %4 : vector<1x128xf32> to vector<8x128xf32>
    %6 = arith.addf %3, %5 : vector<8x128xf32>
    %cst_5 = arith.constant 0.00999999977 : f32
    %7 = vector.broadcast %cst_5 : f32 to vector<8x128xf32>
    %8 = arith.mulf %7, %6 : vector<8x128xf32>
    %9 = arith.maximumf %6, %8 : vector<8x128xf32>
    %10 = arith.truncf %9 : vector<8x128xf32> to vector<8x128xbf16>
    %c0_6 = arith.constant 0 : index
    %c0_7 = arith.constant 0 : index
    %11 = vector.load %arg4[%c0_6, %c0_7] : memref<128x256xbf16, #tpu.memory_space<vmem>>, vector<128x256xbf16>
    %cst_8 = arith.constant dense<0.000000e+00> : vector<8x256xf32>
    %12 = tpu.matmul %10, %11, %cst_8 {dimension_numbers = #tpu.dot_dimension_numbers<[1], [0], [0], [1], [0, 0, 1, 1], [], []>} : vector<8x128xbf16>, vector<128x256xbf16>, vector<8x256xf32> -> vector<8x256xf32>
    %c0_9 = arith.constant 0 : index
    %c0_10 = arith.constant 0 : index
    %13 = vector.load %arg5[%c0_9, %c0_10] : memref<1x256xf32, #tpu.memory_space<vmem>>, vector<1x256xf32>
    %14 = vector.broadcast %13 : vector<1x256xf32> to vector<8x256xf32>
    %15 = arith.addf %12, %14 : vector<8x256xf32>
    %cst_11 = arith.constant 0.00999999977 : f32
    %16 = vector.broadcast %cst_11 : f32 to vector<8x256xf32>
    %17 = arith.mulf %16, %15 : vector<8x256xf32>
    %18 = arith.maximumf %15, %17 : vector<8x256xf32>
    %19 = arith.truncf %18 : vector<8x256xf32> to vector<8x256xbf16>
    %c0_12 = arith.constant 0 : index
    %c0_13 = arith.constant 0 : index
    %20 = vector.load %arg6[%c0_12, %c0_13] : memref<256x128xbf16, #tpu.memory_space<vmem>>, vector<256x128xbf16>
    %cst_14 = arith.constant dense<0.000000e+00> : vector<8x128xf32>
    %21 = tpu.matmul %19, %20, %cst_14 {dimension_numbers = #tpu.dot_dimension_numbers<[1], [0], [0], [1], [0, 0, 1, 1], [], []>} : vector<8x256xbf16>, vector<256x128xbf16>, vector<8x128xf32> -> vector<8x128xf32>
    %c0_15 = arith.constant 0 : index
    %c0_16 = arith.constant 0 : index
    %22 = vector.load %arg7[%c0_15, %c0_16] : memref<1x128xf32, #tpu.memory_space<vmem>>, vector<1x128xf32>
    %23 = vector.broadcast %22 : vector<1x128xf32> to vector<8x128xf32>
    %24 = arith.addf %21, %23 : vector<8x128xf32>
    %c0_17 = arith.constant 0 : index
    %c0_18 = arith.constant 0 : index
    %25 = vector.load %arg8[%c0_17, %c0_18] : memref<8x128xf32, #tpu.memory_space<vmem>>, vector<8x128xf32>
    tpu.vector_store %arg8[%c0_17, %c0_18], %24 {strides = array<i32>} : memref<8x128xf32, #tpu.memory_space<vmem>>, vector<8x128xf32>,
    return
  }
  func.func @transform_0(%arg0: i32) -> (i32, i32) {
    %c0_i32 = arith.constant 0 : i32
    %c0_i32_0 = arith.constant 0 : i32
    return %arg0, %c0_i32 : i32, i32
  }
  func.func @transform_1(%arg0: i32) -> (i32, i32) {
    %c0_i32 = arith.constant 0 : i32
    %c0_i32_0 = arith.constant 0 : i32
    %c0_i32_1 = arith.constant 0 : i32
    return %c0_i32, %c0_i32_0 : i32, i32
  }
  func.func @transform_2(%arg0: i32) -> (i32, i32) {
    %c0_i32 = arith.constant 0 : i32
    %c0_i32_0 = arith.constant 0 : i32
    %c0_i32_1 = arith.constant 0 : i32
    return %c0_i32, %c0_i32_0 : i32, i32
  }
  func.func @transform_3(%arg0: i32) -> (i32, i32) {
    %c0_i32 = arith.constant 0 : i32
    %c0_i32_0 = arith.constant 0 : i32
    %c0_i32_1 = arith.constant 0 : i32
    return %c0_i32, %c0_i32_0 : i32, i32
  }
  func.func @transform_4(%arg0: i32) -> (i32, i32) {
    %c0_i32 = arith.constant 0 : i32
    %c0_i32_0 = arith.constant 0 : i32
    %c0_i32_1 = arith.constant 0 : i32
    return %c0_i32, %c0_i32_0 : i32, i32
  }
  func.func @transform_5(%arg0: i32) -> (i32, i32) {
    %c0_i32 = arith.constant 0 : i32
    %c0_i32_0 = arith.constant 0 : i32
    %c0_i32_1 = arith.constant 0 : i32
    return %c0_i32, %c0_i32_0 : i32, i32
  }
  func.func @transform_6(%arg0: i32) -> (i32, i32) {
    %c0_i32 = arith.constant 0 : i32
    %c0_i32_0 = arith.constant 0 : i32
    %c0_i32_1 = arith.constant 0 : i32
    return %c0_i32, %c0_i32_0 : i32, i32
  }
  func.func @transform_7(%arg0: i32) -> (i32, i32) {
    %c0_i32 = arith.constant 0 : i32
    %c0_i32_0 = arith.constant 0 : i32
    return %arg0, %c0_i32 : i32, i32
  }
}

</mosaic_0001>

<bundles_post_ra>
// kernel: classifier_forward.1
= control target key start
LH: loop header
LB: loop body
LE: loop exit
PB: predicated region body
PF: predicated region fallthrough
CT: control target
= control target key end

     0   :  { %12 = vsyncpa [#allocation3], 0  ;;  %s870_s0 = inlined_call_operand.hbm [shape: f32[8,20], index: 0, kind: input, shape index: {}]   ;;  %s871_s1 = inlined_call_operand.hbm [shape: bf16[20,128], index: 1, kind: input, shape index: {}]   ;;  %s872_s2 = inlined_call_operand.vmem [shape: f32[1,128], index: 2, kind: input, shape index: {}]   ;;  %s873_s3 = inlined_call_operand.hbm [shape: bf16[128,256], index: 3, kind: input, shape index: {}]   ;;  %s874_s4 = inlined_call_operand.vmem [shape: f32[1,256], index: 4, kind: input, shape index: {}]   ;;  %s875_s5 = inlined_call_operand.hbm [shape: bf16[256,128], index: 5, kind: input, shape index: {}]   ;;  %s876_s6 = inlined_call_operand.vmem [shape: f32[1,128], index: 6, kind: input, shape index: {}]   ;;  %s877_s7 = inlined_call_operand.hbm [shape: f32[8,128], index: 7, kind: output, shape index: {}]  }
   0x1   :  { %13 = vsyncpa [#allocation6], 0 }
   0x2   :  { %14 = vsyncpa [#allocation9], 0 }
   0x3   :  { %15 = vsyncpa [#allocation4], 0  ;;  %s743_s24 = smov [#allocation5]   ;;  %s625_s28 = scalar_lea.hbm %s871_s1, 192 }
   0x4   :  { %s31_s25 = sshll.u32 %s743_s24, 4  ;;  %p626_p0 = scmp.ne.s32.totalorder %s871_s1, %s625_s28  ;;  %s32_s25 = int_to_ptr.vmem [resolvable:$true] %s31_s25 }
   0x5   :  { %p629_p1 = scmp.lt.u32.totalorder %s625_s28, %s871_s1 }
   0x7   :  { %p631_p2 = pnand %p629_p1, %p626_p0 }
   0x9   :  { %634 = shalt.err (!%p631_p2)
}
   0xa   :  { %s635_s10 = scalar_lea.vmem %s32_s25, 192  ;;  %p640_p4 = scmp.lt.s32.totalorder %s32_s25, %s32_s25 }
   0xb   :  { %p636_p3 = scmp.ne.s32.totalorder %s32_s25, %s635_s10  ;;  %p641_p5 = scmp.lt.s32.totalorder %s635_s10, %s635_s10 }
   0xd   :  { %p642_p6 = por %p641_p5, %p640_p4 }
   0xf   :  { %p643_p7 = pnand %p642_p6, %p636_p3 }
  0x11   :  { %646 = shalt.err (!%p643_p7)
}
  0x12   :  { %s744_s11 = smov 64   ;;  %s745_s12 = smov 4  }
  0x13   :  { %37 = dma.hbm_to_vmem [thread:$0]  %s871_s1, 192, %s32_s25, [#allocation6], %s744_s11, %s744_s11, %s745_s12  }
  0x14   :  { %s746_s15 = smov [#allocation2]   ;;  %s747_s17 = smov [#allocation7]  }
  0x15   :  { %s22_s16 = sshll.u32 %s746_s15, 4  ;;  %s45_s18 = sshll.u32 %s747_s17, 4  ;;  %s23_s16 = int_to_ptr.vmem [resolvable:$true] %s22_s16  ;;  %s46_s18 = int_to_ptr.vmem [resolvable:$true] %s45_s18 }
  0x16   :  { %s647_s21 = scalar_lea.hbm %s870_s0, 128 }
  0x17   :  { %p648_p8 = scmp.ne.s32.totalorder %s870_s0, %s647_s21  ;;  %p651_p9 = scmp.lt.u32.totalorder %s647_s21, %s870_s0 }
  0x19   :  { %p653_p10 = pnand %p651_p9, %p648_p8 }
  0x1b   :  { %656 = shalt.err (!%p653_p10)
}
  0x1c   :  { %s657_s1 = scalar_lea.vmem %s23_s16, 128  ;;  %p662_p12 = scmp.lt.s32.totalorder %s23_s16, %s23_s16 }
  0x1d   :  { %p658_p11 = scmp.ne.s32.totalorder %s23_s16, %s657_s1  ;;  %p663_p13 = scmp.lt.s32.totalorder %s657_s1, %s657_s1 }
  0x1f   :  { %p664_p0 = por %p663_p13, %p662_p12 }
  0x21   :  { %p665_p1 = pnand %p664_p0, %p658_p11 }
  0x23   :  { %668 = shalt.err (!%p665_p1)
}
  0x24   :  { %25 = dma.hbm_to_vmem [thread:$0]  %s870_s0, 128, %s23_s16, [#allocation3]  }
  0x25   :  { %s669_s30 = scalar_lea.hbm %s873_s3, 2048 }
  0x26   :  { %p670_p2 = scmp.ne.s32.totalorder %s873_s3, %s669_s30  ;;  %p673_p3 = scmp.lt.u32.totalorder %s669_s30, %s873_s3 }
  0x28   :  { %p675_p4 = pnand %p673_p3, %p670_p2 }
  0x2a   :  { %678 = shalt.err (!%p675_p4)
}
  0x2b   :  { %s679_s14 = scalar_lea.vmem %s46_s18, 2048  ;;  %p684_p6 = scmp.lt.s32.totalorder %s46_s18, %s46_s18 }
  0x2c   :  { %p680_p5 = scmp.ne.s32.totalorder %s46_s18, %s679_s14  ;;  %p685_p7 = scmp.lt.s32.totalorder %s679_s14, %s679_s14 }
  0x2e   :  { %p686_p8 = por %p685_p7, %p684_p6 }
  0x30   :  { %p687_p9 = pnand %p686_p8, %p680_p5 }
  0x32   :  { %690 = shalt.err (!%p687_p9)
}
  0x33   :  { %s748_s0 = smov 128   ;;  %s749_s15 = smov 8  }
  0x34   :  { %51 = dma.hbm_to_vmem [thread:$0]  %s873_s3, 2048, %s46_s18, [#allocation6], %s748_s0, %s748_s0, %s749_s15  }
  0x35   :  { %s750_s19 = smov [#allocation8]   ;;  %s691_s23 = scalar_lea.hbm %s875_s5, 2048 }
  0x36   :  { %s59_s20 = sshll.u32 %s750_s19, 4  ;;  %p692_p10 = scmp.ne.s32.totalorder %s875_s5, %s691_s23  ;;  %s60_s20 = int_to_ptr.vmem [resolvable:$true] %s59_s20 }
  0x37   :  { %p695_p11 = scmp.lt.u32.totalorder %s691_s23, %s875_s5 }
  0x39   :  { %p697_p12 = pnand %p695_p11, %p692_p10 }
  0x3b   :  { %700 = shalt.err (!%p697_p12)
}
  0x3c   :  { %s701_s27 = scalar_lea.vmem %s60_s20, 2048  ;;  %p706_p0 = scmp.lt.s32.totalorder %s60_s20, %s60_s20 }
  0x3d   :  { %p702_p13 = scmp.ne.s32.totalorder %s60_s20, %s701_s27  ;;  %p707_p1 = scmp.lt.s32.totalorder %s701_s27, %s701_s27 }
  0x3f   :  { %p708_p2 = por %p707_p1, %p706_p0 }
  0x41   :  { %p709_p3 = pnand %p708_p2, %p702_p13 }
  0x43   :  { %712 = shalt.err (!%p709_p3)
}
  0x44   :  { %65 = dma.hbm_to_vmem [thread:$0]  %s875_s5, 2048, %s60_s20, [#allocation9], %s744_s11, %s744_s11, %s745_s12  }
  0x45   :  { %735 = dma.done.wait [#allocation3], 128  }
  0x46   :  { %736 = vsyncadd [#allocation3], 4294967168 }
  0x47   :  { %737 = dma.done.wait [#allocation6], 2240  }
  0x48   :  { %738 = vsyncadd [#allocation6], 4294965056 }
  0x49   :  { %739 = dma.done.wait [#allocation9], 2048  }
  0x4a   :  { %740 = vsyncadd [#allocation9], 4294965248  ;;  %v751_v0 = vmov 0.0   ;;  %vm752_vm0 = vmmov 0   ;;  %v583_v1 = vld [vmem:[#allocation5] sm:$0xff]   ;;  %vm106_vm1 = vcmask 1041408   ;;  %v171_v48 = vlaneseq }
  0x4b   :  { %563 = vmatprep.subr.bf16.mxu0 %v751_v0  ;;  %567 = vmatprep.mubr.msk.bf16.mxu0 %vm752_vm0, %v751_v0  ;;  %v584_v2 = vld [vmem:[#allocation5 + $0x8] ss:$0 sps:$4 sm:$0x33]   ;;  %v81_v3 = vld [vmem:[#allocation2] sm:$0xff]  ;;  %v587_v6 = vld [vmem:[#allocation7] ss:$8 sps:$4 sm:$0xff]  }
  0x4c   :  { %564 = vmatpush3.bf16.msra.mxu0 %v583_v1  ;;  %v585_v4 = vld [vmem:[#allocation7 + $0x4] ss:$8 sps:$4 sm:$0xff]   ;;  %v108_v5 = vsel %vm106_vm1, %v584_v2, 0  ;;  %v588_v7 = vld [vmem:[#allocation7 + $0x14] ss:$8 sps:$4 sm:$0xff]   ;;  %v82_v8 = vpack.c.bf16 %v81_v3, %v81_v3  ;;  %vm102_vm2 = vcmask 162816  }
  0x4d   :  { %565 = vmatprep.subr.bf16.mxu0 %v751_v0  ;;  %261 = vmatprep.subr.bf16.mxu1 %v585_v4  ;;  %v590_v9 = vld [vmem:[#allocation7 + $0x10] ss:$8 sps:$4 sm:$0xff]   ;;  %v591_v10 = vld [vmem:[#allocation7 + $0x24] ss:$8 sps:$4 sm:$0xff]   ;;  %v593_v11 = vld [vmem:[#allocation7 + $0x20] ss:$8 sps:$4 sm:$0xff]  }
  0x4e   :  { %262 = vmatpush1.bf16.msra.mxu1 %v587_v6  ;;  %v594_v12 = vld [vmem:[#allocation7 + $0x34] ss:$8 sps:$4 sm:$0xff]   ;;  %v596_v13 = vld [vmem:[#allocation7 + $0x30] ss:$8 sps:$4 sm:$0xff]   ;;  %v597_v14 = vld [vmem:[#allocation7 + $0x44] ss:$8 sps:$4 sm:$0xff]  }
  0x4f   :  { %263 = vmatprep.subr.bf16.mxu1 %v588_v7  ;;  %v599_v15 = vld [vmem:[#allocation7 + $0x40] ss:$8 sps:$4 sm:$0xff]   ;;  %v600_v16 = vld [vmem:[#allocation7 + $0x54] ss:$8 sps:$4 sm:$0xff]   ;;  %v602_v17 = vld [vmem:[#allocation7 + $0x50] ss:$8 sps:$4 sm:$0xff]  }
  0x50   :  { %566 = vmatpush3.bf16.msra.mxu0 %v108_v5  ;;  %v603_v18 = vld [vmem:[#allocation7 + $0x64] ss:$8 sps:$4 sm:$0xff]   ;;  %v605_v19 = vld [vmem:[#allocation7 + $0x60] ss:$8 sps:$4 sm:$0xff]   ;;  %v606_v20 = vld [vmem:[#allocation7 + $0x74] ss:$8 sps:$4 sm:$0xff]  }
  0x51   :  { %v608_v21 = vld [vmem:[#allocation7 + $0x70] ss:$8 sps:$4 sm:$0xff]   ;;  %v753_v22 = vmov 0   ;;  %v609_v23 = vld [vmem:[#allocation8 + $0x40] sm:$0xff]   ;;  %v611_v25 = vld [vmem:[#allocation8 + $0x48] sm:$0xff]   ;;  %v172_v49 = vshrl.u32 %v171_v48, 7 }
  0x52   :  { %264 = vmatpush1.bf16.msra.mxu1 %v590_v9  ;;  %293 = vmatprep.mubr.bf16.mxu1 %v753_v22  ;;  %v610_v24 = vld [vmem:[#allocation8] sm:$0xff]   ;;  %v612_v26 = vld [vmem:[#allocation8 + $0x8] sm:$0xff]   ;;  %v613_v27 = vld [vmem:[#allocation8 + $0x50] sm:$0xff]   ;;  %s754_s29 = smov [#allocation10]  }
  0x53   :  { %568 = vmatmul.mubr.msk.bf16.vlgmr.msra.gmra.mrb[0].mxu0 %vm102_vm2, %v82_v8  ;;  %265 = vmatprep.subr.bf16.mxu1 %v591_v10  ;;  %v614_v28 = vld [vmem:[#allocation8 + $0x10] sm:$0xff]   ;;  %v615_v29 = vld [vmem:[#allocation8 + $0x58] sm:$0xff]   ;;  %v617_v31 = vld [vmem:[#allocation8 + $0x60] sm:$0xff]   ;;  %v173_v50 = vsub.s32 0, %v172_v49  ;;  %v177_v52 = vsub.s32 1, %v172_v49  ;;  %s490_s30 = sshll.u32 %s754_s29, 4  ;;  %s491_s30 = int_to_ptr.vmem [resolvable:$true] %s490_s30 }
  0x54   :  { %541 = vmatprep.subr.bf16.mxu0 %v609_v23  ;;  %v616_v30 = vld [vmem:[#allocation8 + $0x18] sm:$0xff]   ;;  %v618_v32 = vld [vmem:[#allocation8 + $0x20] sm:$0xff]   ;;  %v619_v33 = vld [vmem:[#allocation8 + $0x68] sm:$0xff]   ;;  %s713_s8 = scalar_lea.vmem %s491_s30, 128  ;;  %p718_p5 = scmp.lt.s32.totalorder %s491_s30, %s491_s30 }
  0x55   :  { %542 = vmatpush3.bf16.msra.mxu0 %v610_v24  ;;  %v501_v34 = vld [vmem:[%s872_s2] ss:$0 sm:$0xff]  ;;  %v621_v44 = vld [vmem:[#allocation8 + $0x70] sm:$0xff]   ;;  %v623_v46 = vld [vmem:[#allocation8 + $0x78] sm:$0xff]   ;;  %p714_p4 = scmp.ne.s32.totalorder %s491_s30, %s713_s8  ;;  %p719_p6 = scmp.lt.s32.totalorder %s713_s8, %s713_s8 }
  0x56   :  { %266 = vmatpush1.bf16.msra.mxu1 %v593_v11  ;;  %543 = vmatprep.subr.bf16.mxu0 %v611_v25  ;;  %v620_v43 = vld [vmem:[#allocation8 + $0x28] sm:$0xff]   ;;  %v622_v45 = vld [vmem:[#allocation8 + $0x30] sm:$0xff]   ;;  %v624_v47 = vld [vmem:[#allocation8 + $0x38] sm:$0xff]  }
  0x57   :  { %267 = vmatprep.subr.bf16.mxu1 %v594_v12  ;;  %v169_v51 = vld [vmem:[%s874_s4] sm:$0x3]  ;;  %p720_p7 = por %p719_p6, %p718_p5 }
  0x58   :  { %v174_v53 = vrot.slane %v169_v51, %v173_v50  ;;  %v178_v54 = vrot.slane %v169_v51, %v177_v52  ;;  %v521_v4 = vld [vmem:[%s876_s6] ss:$0 sm:$0xff] }
  0x59   :  { %544 = vmatpush3.bf16.msra.mxu0 %v612_v26  ;;  %p721_p8 = pnand %p720_p7, %p714_p4 }
  0x5a   :  { %268 = vmatpush1.bf16.msra.mxu1 %v596_v13  ;;  %545 = vmatprep.subr.bf16.mxu0 %v613_v27 }
  0x5b   :  { %269 = vmatprep.subr.bf16.mxu1 %v597_v14 }
  0x5d   :  { %546 = vmatpush3.bf16.msra.mxu0 %v614_v28 }
  0x5e   :  { %270 = vmatpush1.bf16.msra.mxu1 %v599_v15  ;;  %547 = vmatprep.subr.bf16.mxu0 %v615_v29 }
  0x5f   :  { %271 = vmatprep.subr.bf16.mxu1 %v600_v16 }
  0x61   :  { %548 = vmatpush3.bf16.msra.mxu0 %v616_v30 }
  0x62   :  { %272 = vmatpush1.bf16.msra.mxu1 %v602_v17  ;;  %549 = vmatprep.subr.bf16.mxu0 %v617_v31 }
  0x63   :  { %273 = vmatprep.subr.bf16.mxu1 %v603_v18 }
  0x65   :  { %550 = vmatpush3.bf16.msra.mxu0 %v618_v32 }
  0x66   :  { %274 = vmatpush1.bf16.msra.mxu1 %v605_v19  ;;  %551 = vmatprep.subr.bf16.mxu0 %v619_v33 }
  0x67   :  { %275 = vmatprep.subr.bf16.mxu1 %v606_v20 }
  0x69   :  { %552 = vmatpush3.bf16.msra.mxu0 %v620_v43 }
  0x6a   :  { %276 = vmatpush1.bf16.msra.mxu1 %v608_v21  ;;  %553 = vmatprep.subr.bf16.mxu0 %v621_v44 }
  0x6d   :  { %554 = vmatpush3.bf16.msra.mxu0 %v622_v45 }
  0x6e   :  { %555 = vmatprep.subr.bf16.mxu0 %v623_v46 }
  0x71   :  { %556 = vmatpush3.bf16.msra.mxu0 %v624_v47 }
 0x126   :  { %v144_v35 = vpop.f32.mrb[0].mxu0 }
 0x127   :  { %v145_v36 = vadd.f32 %v501_v34, %v144_v35  ;;  %v569_v37 = vpop.f32.mrb[1].mxu0 }
 0x128   :  { %v147_v38 = vpop.f32.mrb[2].mxu0 }
 0x129   :  { %v150_v39 = vmul.f32 0.01, %v145_v36  ;;  %v570_v40 = vpop.f32.mrb[3].mxu0 }
 0x12b   :  { %v151_v41 = vmax.f32 %v145_v36, %v150_v39 }
 0x12d   :  { %v152_v42 = vpack.c.bf16 %v151_v41, %v151_v41 }
 0x12f   :  { %294 = vmatmul.mubr.bf16.vlgmr.msra.gmra.mrb[0].mxu1 %v152_v42 }
 0x202   :  { %v295_v55 = vpop.f32.mrb[0].mxu1 }
 0x203   :  { %v296_v56 = vadd.f32 %v295_v55, %v174_v53  ;;  %v297_v57 = vpop.f32.mrb[1].mxu1 }
 0x204   :  { %v298_v58 = vadd.f32 %v297_v57, %v178_v54  ;;  %v299_v59 = vpop.f32.mrb[2].mxu1 }
 0x205   :  { %v302_v60 = vmul.f32 0.01, %v296_v56  ;;  %v300_v61 = vpop.f32.mrb[3].mxu1 }
 0x206   :  { %v303_v62 = vmul.f32 0.01, %v298_v58 }
 0x207   :  { %v304_v63 = vmax.f32 %v296_v56, %v302_v60 }
 0x208   :  { %v305_v0 = vmax.f32 %v298_v58, %v303_v62 }
 0x209   :  { %v306_v2 = vpack.c.bf16 %v304_v63, %v304_v63 }
 0x20a   :  { %v307_v1 = vpack.c.bf16 %v305_v0, %v305_v0 }
 0x20c   :  { %475 = vmatprep.mubr.bf16.mxu0 %v307_v1 }
 0x20d   :  { %476 = vmatmul.mubr.bf16.vlgmr.msra.gmra.mrb[4].mxu0 %v306_v2 }
 0x2e0   :  { %v557_v3 = vpop.f32.mrb[4].mxu0 }
 0x2e1   :  { %v558_v5 = vpop.f32.mrb[5].mxu0 }
 0x2e2   :  { %v559_v6 = vadd.f32 %v558_v5, %v557_v3  ;;  %v560_v7 = vpop.f32.mrb[6].mxu0 }
 0x2e3   :  { %v561_v8 = vpop.f32.mrb[7].mxu0 }
 0x2e4   :  { %v478_v9 = vadd.f32 %v559_v6, %v521_v4 }
 0x2e6   :  { %483 = vst [vmem:[#allocation10] sm:$0xff] %v478_v9 }
 0x2e7   :  { %724 = shalt.err (!%p721_p8)
}
 0x2e8   :  { %s725_s6 = scalar_lea.hbm %s877_s7, 128 }
 0x2e9   :  { %p726_p9 = scmp.ne.s32.totalorder %s877_s7, %s725_s6  ;;  %p729_p10 = scmp.lt.u32.totalorder %s725_s6, %s877_s7 }
 0x2eb   :  { %p731_p11 = pnand %p729_p10, %p726_p9 }
 0x2ed   :  { %734 = shalt.err (!%p731_p11)
}
 0x2ee   :  { %493 = dma.vmem_to_hbm [thread:$0]  %s491_s30, 128, %s877_s7, [#allocation4]  }
 0x2ef   :  { %741 = dma.done.wait [#allocation4], 128  }
 0x2f0   :  { %742 = vsyncadd [#allocation4], 4294967168 }
 0x2f1   :  { %497 = vsyncpa [#allocation3], 1 }
 0x2f2   :  { %498 = vsyncpa [#allocation6], 1 }
 0x2f3   :  { %499 = vsyncpa [#allocation9], 1 }
 0x2f4   :  { %500 = vsyncpa [#allocation4], 1 }

</bundles_post_ra>
